<compile_context>
chip_gen: v7x
topology: tpu7x:2x2x1
jax: 0.10.0
libtpu: 0.0.40
codegen_flags: <defaults>
</compile_context>

<pallas_src>
import functools

import jax
import jax.numpy as jnp
from jax.experimental import pallas as pl
from jax.experimental.pallas import tpu as pltpu

# default mlu_qscheme (original global not shown; chosen deterministically)
MLU_QSCHEME = {"data_scale": 1.0, "iteration": 1}


def _minmax_kernel(x_ref, prev_ref, out_ref, min_sc, max_sc, *,
                   K, tk, data_scale, compute_dtype):
    """Grid = (row_groups, k_tiles); k (last axis) is the reduction axis."""
    k = pl.program_id(1)
    n_k = pl.num_programs(1)

    @pl.when(k == 0)
    def _():
        min_sc[...] = jnp.full(min_sc.shape, jnp.inf, compute_dtype)
        max_sc[...] = jnp.full(max_sc.shape, -jnp.inf, compute_dtype)

    xb = x_ref[...]                              # native dtype tile (tr, tk)
    if xb.dtype != compute_dtype:
        xb = xb.astype(compute_dtype)            # only for non-float inputs

    def _update(blk_for_min, blk_for_max):
        min_sc[...] = jnp.minimum(
            min_sc[...], jnp.min(blk_for_min, axis=1, keepdims=True))
        max_sc[...] = jnp.maximum(
            max_sc[...], jnp.max(blk_for_max, axis=1, keepdims=True))

    if K % tk != 0:
        # Only the last K-tile is ragged; mask only there.
        @pl.when(k != n_k - 1)
        def _():
            _update(xb, xb)

        @pl.when(k == n_k - 1)
        def _():
            col = k * tk + jax.lax.broadcasted_iota(jnp.int32, xb.shape, 1)
            valid = col < K
            pos = jnp.array(jnp.inf, compute_dtype)
            neg = jnp.array(-jnp.inf, compute_dtype)
            _update(jnp.where(valid, xb, pos), jnp.where(valid, xb, neg))
    else:
        _update(xb, xb)

    @pl.when(k == n_k - 1)
    def _():
        # Finalize: cast reduced per-row values to f32, scale, combine with
        # the previous running min/max (NaN propagates like torch.min/max).
        imin = min_sc[...].astype(jnp.float32) * data_scale
        imax = max_sc[...].astype(jnp.float32) * data_scale
        out_ref[:, 0:1] = jnp.minimum(imin, prev_ref[:, 0:1])
        out_ref[:, 1:2] = jnp.maximum(imax, prev_ref[:, 1:2])


def _choose_tr(R, cap=512):
    """Rows per group: multiple of 8 (or full R), capped, >=2 groups when possible."""
    if R <= 8:
        return R                                  # full-dim block (legal)
    half = -(-R // 2)                             # ceil(R/2): >=2 row groups
    tr = -(-half // 8) * 8                        # round up to multiple of 8
    return int(max(8, min(tr, cap)))


def _choose_tk(tr, K, itemsize, target_bytes=8 << 20):
    """K-tile width: multiple of 128, ~target_bytes of *actual* bytes per block."""
    tk = (target_bytes // max(tr * itemsize, 1)) // 128 * 128
    if tk >= K or K <= 128:
        return int(K)                             # single full-width block
    return int(max(128, tk))


def per_channel_minmax_observe(x, prev_min=None, prev_max=None,
                               data_scale=1.0, tk=None, tr_cap=512):
    """One observer forward step.

    Returns (x_unchanged, new_min_vals, new_max_vals); min/max have shape
    (x.shape[0],), matching the per-channel (ch_axis=0) semantics.
    """
    R = x.shape[0]
    K = 1
    for d in x.shape[1:]:
        K *= d
    assert K >= 1, "observer input must have at least one element per channel"

    # Small-R sublane packing: (R, K) -> (R*f, K/f) fills vregs and creates a
    # >=2-wide "parallel" row axis (v7x megacore).  Per-row min/max commutes
    # with the split for data_scale >= 0; partials folded after the kernel.
    f = 1
    if R < 16 and data_scale >= 0:
        for cand in (8, 4, 2):
            if K % cand == 0 and K // cand >= 128:
                f = cand
                break

    Rp, Kp = R * f, K // f
    y = jnp.reshape(x, (Rp, Kp))                  # native dtype, contiguous

    # Reductions run in the native dtype for floats (exact for min/max);
    # non-float inputs are cast to f32 inside the kernel.
    compute_dtype = x.dtype if jnp.issubdtype(x.dtype, jnp.floating) else jnp.float32

    if prev_min is None:
        prev_min = jnp.full((R,), jnp.inf, dtype=jnp.float32)
    if prev_max is None:
        prev_max = jnp.full((R,), -jnp.inf, dtype=jnp.float32)
    prev = jnp.stack([prev_min.astype(jnp.float32),
                      prev_max.astype(jnp.float32)], axis=1)     # (R, 2)
    if f > 1:
        prev = jnp.repeat(prev, f, axis=0)                       # (Rp, 2)

    tr = _choose_tr(Rp, tr_cap)
    G = pl.cdiv(Rp, tr)

    if tk is None:
        tk = _choose_tk(tr, Kp, x.dtype.itemsize)
    assert tk == Kp or tk % 128 == 0
    grid_k = pl.cdiv(Kp, tk)

    kernel = functools.partial(_minmax_kernel, K=Kp, tk=tk,
                               data_scale=float(data_scale),
                               compute_dtype=compute_dtype)

    out = pl.pallas_call(
        kernel,
        out_shape=jax.ShapeDtypeStruct((Rp, 2), jnp.float32),
        grid_spec=pltpu.PrefetchScalarGridSpec(
            num_scalar_prefetch=0,
            grid=(G, grid_k),
            in_specs=[
                pl.BlockSpec((tr, tk), lambda r, k: (r, k)),
                pl.BlockSpec((tr, 2), lambda r, k: (r, 0)),
            ],
            out_specs=pl.BlockSpec((tr, 2), lambda r, k: (r, 0)),
            scratch_shapes=[
                pltpu.VMEM((tr, 1), compute_dtype),
                pltpu.VMEM((tr, 1), compute_dtype),
            ],
        ),
        compiler_params=pltpu.CompilerParams(
            dimension_semantics=("parallel", "arbitrary"),
            vmem_limit_bytes=32 * 1024 * 1024),
    )(y, prev)

    if f > 1:
        out3 = out.reshape(R, f, 2)
        new_min = jnp.min(out3[:, :, 0], axis=1)
        new_max = jnp.max(out3[:, :, 1], axis=1)
    else:
        new_min = out[:, 0]
        new_max = out[:, 1]

    # forward() returns x_orig unchanged; observer state is updated.
    return x, new_min, new_max


def calculate_per_channel_qparams(min_vals, max_vals, dtype="int8"):
    # Host-side glue mirroring _calculate_per_channel_qparams (not a hot path).
    qmax = 127.0 if dtype == "int8" else 32767.0
    absmax = jnp.maximum(max_vals, -min_vals)
    return jnp.where(absmax != 0, qmax / absmax, 1.0)


def _ref_observe(xa, pmn, pmx, data_scale):
    ya = jnp.reshape(xa, (xa.shape[0], -1)).astype(jnp.float32)
    imn = jnp.min(ya, axis=1) * data_scale
    imx = jnp.max(ya, axis=1) * data_scale
    if pmn is None:
        return imn, imx
    return jnp.minimum(imn, pmn), jnp.maximum(imx, pmx)


if __name__ == "__main__":
    data_scale = MLU_QSCHEME["data_scale"]

    # --- test 1: NCHW activation, two sequential calls (running min/max) ---
    x = jax.random.normal(jax.random.PRNGKey(0), (2, 4, 16, 16),
                          dtype=jnp.float32)
    x_out, min_vals, max_vals = per_channel_minmax_observe(
        x, None, None, data_scale=data_scale)
    jax.block_until_ready((x_out, min_vals, max_vals))

    x2 = jax.random.normal(jax.random.PRNGKey(1), (2, 4, 16, 16),
                           dtype=jnp.float32)
    _, min_vals, max_vals = per_channel_minmax_observe(
        x2, min_vals, max_vals, data_scale=data_scale)
    jax.block_until_ready((min_vals, max_vals))

    rmn, rmx = _ref_observe(x, None, None, data_scale)
    rmn, rmx = _ref_observe(x2, rmn, rmx, data_scale)
    assert jnp.allclose(min_vals, rmn, atol=1e-6)
    assert jnp.allclose(max_vals, rmx, atol=1e-6)

    # --- test 2: weight-like tensor, multi row-group + ragged multi K-tile ---
    w = jax.random.normal(jax.random.PRNGKey(2), (32, 5, 7, 7),
                          dtype=jnp.float32)
    _, wmin, wmax = per_channel_minmax_observe(
        w, None, None, data_scale=data_scale, tk=128)
    jax.block_until_ready((wmin, wmax))
    rwmn, rwmx = _ref_observe(w, None, None, data_scale)
    assert jnp.allclose(wmin, rwmn, atol=1e-6)
    assert jnp.allclose(wmax, rwmx, atol=1e-6)

    # --- test 3: bf16 input streamed + reduced natively (no full-tile cast) ---
    xb = jax.random.normal(jax.random.PRNGKey(3), (2, 4, 16, 16),
                           dtype=jnp.bfloat16)
    _, bmin, bmax = per_channel_minmax_observe(
        xb, None, None, data_scale=data_scale)
    jax.block_until_ready((bmin, bmax))
    rbmn, rbmx = _ref_observe(xb, None, None, data_scale)
    assert jnp.allclose(bmin, rbmn, atol=1e-6)
    assert jnp.allclose(bmax, rbmx, atol=1e-6)

    # --- test 4: ragged rows + small-R fold with non-multiple-of-128 K ---
    z = jax.random.normal(jax.random.PRNGKey(4), (10, 300), dtype=jnp.float32)
    _, zmin, zmax = per_channel_minmax_observe(
        z, None, None, data_scale=data_scale)
    jax.block_until_ready((zmin, zmax))
    rzmn, rzmx = _ref_observe(z, None, None, data_scale)
    assert jnp.allclose(zmin, rzmn, atol=1e-6)
    assert jnp.allclose(zmax, rzmx, atol=1e-6)

    # calculate_qparams glue (not part of forward hot path)
    scales = calculate_per_channel_qparams(min_vals, max_vals, dtype="int8")
    jax.block_until_ready(scales)

    print("KERNEL_OK")
</pallas_src>

<mosaic_0001>
module attributes {stable_mosaic.version = 11 : i64} {
  func.func @_minmax_kernel(%arg0: i32, %arg1: i32, %arg2: memref<8x128xf32, #tpu.memory_space<vmem>>, %arg3: memref<8x2xf32, #tpu.memory_space<vmem>>, %arg4: memref<8x2xf32, #tpu.memory_space<vmem>>, %arg5: memref<8x1xf32, #tpu.memory_space<vmem>>, %arg6: memref<8x1xf32, #tpu.memory_space<vmem>>) attributes {dimension_semantics = [#tpu.dimension_semantics<parallel>, #tpu.dimension_semantics<arbitrary>], iteration_bounds = array<i64: 2, 1>, scalar_prefetch = 0 : i64, scratch_operands = 2 : i64, tpu.core_type = #tpu.core_type<tc>, window_params = [{transform_indices = @transform_0, window_bounds = array<i64: 8, 128>}, {transform_indices = @transform_1, window_bounds = array<i64: 8, 2>}, {transform_indices = @transform_2, window_bounds = array<i64: 8, 2>}]} {
    %c0_i32 = arith.constant 0 : i32
    %0 = arith.cmpi eq, %arg1, %c0_i32 : i32
    %1 = arith.extui %0 : i1 to i32
    %c0_i32_0 = arith.constant 0 : i32
    %2 = arith.cmpi ne, %1, %c0_i32_0 : i32
    scf.if %2 {
      %cst_13 = arith.constant 0x7F800000 : f32
      %17 = vector.broadcast %cst_13 : f32 to vector<8x1xf32>
      %c0_14 = arith.constant 0 : index
      %c0_15 = arith.constant 0 : index
      %18 = vector.load %arg5[%c0_14, %c0_15] : memref<8x1xf32, #tpu.memory_space<vmem>>, vector<8x1xf32>
      tpu.vector_store %arg5[%c0_14, %c0_15], %17 {strides = array<i32>} : memref<8x1xf32, #tpu.memory_space<vmem>>, vector<8x1xf32>,
      %cst_16 = arith.constant 0xFF800000 : f32
      %19 = vector.broadcast %cst_16 : f32 to vector<8x1xf32>
      %c0_17 = arith.constant 0 : index
      %c0_18 = arith.constant 0 : index
      %20 = vector.load %arg6[%c0_17, %c0_18] : memref<8x1xf32, #tpu.memory_space<vmem>>, vector<8x1xf32>
      tpu.vector_store %arg6[%c0_17, %c0_18], %19 {strides = array<i32>} : memref<8x1xf32, #tpu.memory_space<vmem>>, vector<8x1xf32>,
    } else {
    }
    %c0 = arith.constant 0 : index
    %c0_1 = arith.constant 0 : index
    %3 = vector.load %arg2[%c0, %c0_1] : memref<8x128xf32, #tpu.memory_space<vmem>>, vector<8x128xf32>
    %c0_2 = arith.constant 0 : index
    %c0_3 = arith.constant 0 : index
    %4 = vector.load %arg5[%c0_2, %c0_3] : memref<8x1xf32, #tpu.memory_space<vmem>>, vector<8x1xf32>
    %cst = arith.constant dense<0x7F800000> : vector<8xf32>
    %5 = vector.multi_reduction <minimumf>, %3, %cst [1] : vector<8x128xf32> to vector<8xf32>
    %6 = vector.shape_cast %5 : vector<8xf32> to vector<8x1xf32>
    %7 = arith.minimumf %4, %6 : vector<8x1xf32>
    %c0_4 = arith.constant 0 : index
    %c0_5 = arith.constant 0 : index
    %8 = vector.load %arg5[%c0_4, %c0_5] : memref<8x1xf32, #tpu.memory_space<vmem>>, vector<8x1xf32>
    tpu.vector_store %arg5[%c0_4, %c0_5], %7 {strides = array<i32>} : memref<8x1xf32, #tpu.memory_space<vmem>>, vector<8x1xf32>,
    %c0_6 = arith.constant 0 : index
    %c0_7 = arith.constant 0 : index
    %9 = vector.load %arg6[%c0_6, %c0_7] : memref<8x1xf32, #tpu.memory_space<vmem>>, vector<8x1xf32>
    %cst_8 = arith.constant dense<0xFF800000> : vector<8xf32>
    %10 = vector.multi_reduction <maximumf>, %3, %cst_8 [1] : vector<8x128xf32> to vector<8xf32>
    %11 = vector.shape_cast %10 : vector<8xf32> to vector<8x1xf32>
    %12 = arith.maximumf %9, %11 : vector<8x1xf32>
    %c0_9 = arith.constant 0 : index
    %c0_10 = arith.constant 0 : index
    %13 = vector.load %arg6[%c0_9, %c0_10] : memref<8x1xf32, #tpu.memory_space<vmem>>, vector<8x1xf32>
    tpu.vector_store %arg6[%c0_9, %c0_10], %12 {strides = array<i32>} : memref<8x1xf32, #tpu.memory_space<vmem>>, vector<8x1xf32>,
    %c0_i32_11 = arith.constant 0 : i32
    %14 = arith.cmpi eq, %arg1, %c0_i32_11 : i32
    %15 = arith.extui %14 : i1 to i32
    %c0_i32_12 = arith.constant 0 : i32
    %16 = arith.cmpi ne, %15, %c0_i32_12 : i32
    scf.if %16 {
      %c0_13 = arith.constant 0 : index
      %c0_14 = arith.constant 0 : index
      %17 = vector.load %arg5[%c0_13, %c0_14] : memref<8x1xf32, #tpu.memory_space<vmem>>, vector<8x1xf32>
      %cst_15 = arith.constant 1.000000e+00 : f32
      %18 = vector.broadcast %cst_15 : f32 to vector<8x1xf32>
      %19 = arith.mulf %17, %18 : vector<8x1xf32>
      %c0_16 = arith.constant 0 : index
      %c0_17 = arith.constant 0 : index
      %20 = vector.load %arg6[%c0_16, %c0_17] : memref<8x1xf32, #tpu.memory_space<vmem>>, vector<8x1xf32>
      %cst_18 = arith.constant 1.000000e+00 : f32
      %21 = vector.broadcast %cst_18 : f32 to vector<8x1xf32>
      %22 = arith.mulf %20, %21 : vector<8x1xf32>
      %c0_19 = arith.constant 0 : index
      %c0_20 = arith.constant 0 : index
      %23 = vector.load %arg3[%c0_19, %c0_20] : memref<8x2xf32, #tpu.memory_space<vmem>>, vector<8x1xf32>
      %24 = arith.minimumf %19, %23 : vector<8x1xf32>
      %c0_21 = arith.constant 0 : index
      %c0_22 = arith.constant 0 : index
      %25 = vector.load %arg4[%c0_21, %c0_22] : memref<8x2xf32, #tpu.memory_space<vmem>>, vector<8x1xf32>
      tpu.vector_store %arg4[%c0_21, %c0_22], %24 {strides = array<i32>} : memref<8x2xf32, #tpu.memory_space<vmem>>, vector<8x1xf32>,
      %c0_23 = arith.constant 0 : index
      %c1 = arith.constant 1 : index
      %26 = vector.load %arg3[%c0_23, %c1] : memref<8x2xf32, #tpu.memory_space<vmem>>, vector<8x1xf32>
      %27 = arith.maximumf %22, %26 : vector<8x1xf32>
      %c0_24 = arith.constant 0 : index
      %c1_25 = arith.constant 1 : index
      %28 = vector.load %arg4[%c0_24, %c1_25] : memref<8x2xf32, #tpu.memory_space<vmem>>, vector<8x1xf32>
      tpu.vector_store %arg4[%c0_24, %c1_25], %27 {strides = array<i32>} : memref<8x2xf32, #tpu.memory_space<vmem>>, vector<8x1xf32>,
    } else {
    }
    return
  }
  func.func @transform_0(%arg0: i32, %arg1: i32) -> (i32, i32) {
    %c0_i32 = arith.constant 0 : i32
    return %arg0, %arg1 : i32, i32
  }
  func.func @transform_1(%arg0: i32, %arg1: i32) -> (i32, i32) {
    %c0_i32 = arith.constant 0 : i32
    %c0_i32_0 = arith.constant 0 : i32
    return %arg0, %c0_i32 : i32, i32
  }
  func.func @transform_2(%arg0: i32, %arg1: i32) -> (i32, i32) {
    %c0_i32 = arith.constant 0 : i32
    %c0_i32_0 = arith.constant 0 : i32
    return %arg0, %c0_i32 : i32, i32
  }
}

</mosaic_0001>

<bundles_post_ra>
// kernel: tpu_custom_call.1
= control target key start
LH: loop header
LB: loop body
LE: loop exit
PB: predicated region body
PF: predicated region fallthrough
CT: control target
= control target key end

     0   :  { %s375_s9 = smov 0   ;;  %s377_s10 = smov 0   ;;  %s416_s0 = inlined_call_operand.vmem [shape: f32[16,128], index: 0, kind: input, shape index: {}]   ;;  %s417_s1 = inlined_call_operand.vmem [shape: f32[16,2], index: 1, kind: input, shape index: {}]   ;;  %s418_s2 = inlined_call_operand.vmem [shape: f32[16,2], index: 2, kind: output, shape index: {}]  }
   0x1   :  { %s379_s11 = smov 0  }
   0x2 LB: > { %s24_s12 = sadd.s32 1, %s350_s10  ;;  %p298_p0 = scmp.ge.s32.totalorder %s354_s11, 1  ;;  %s354_s11 = sphi %s379_s11, %s12_s11   ;;  %s350_s10 = sphi %s377_s10, %s420_s10   ;;  %s346_s9 = sphi %s375_s9, %s419_s9  }
   0x3   : > { %p26_p1 = scmp.ge.s32.totalorder %s24_s12, 2  ;;  %p137_p2 = scmp.lt.s32.totalorder %s354_s11, 3 }
   0x5   : > { %s422_s12 = smov (%p26_p1, %s24_s12), 0  ;;  %p138_p3 = pnand %p298_p0, %p137_p2 }
   0x6   : > { %p164_p4 = scmp.lt.s32.totalorder (!%p138_p3), %s346_s9, 1  ;;  %vm183_vm0 = vcmask (!%p138_p3), 7168   ;;  %v356_v0 = vmov (!%p138_p3), -inf   ;;  %s357_s20 = smov (!%p138_p3), 127   ;;  %v358_v3 = vmov (!%p138_p3), inf   ;;  %vm216_vm1 = vcmask (!%p138_p3), 15368  }
   0x7   : > { %141 = sbr.rel (%p138_p3) target bundleno = 288 (0x120), region = 28  ;;  %185 = vst.msk [vmem:[#allocation3] sm:$0xff] (!%p138_p3), %vm183_vm0, %v356_v0  ;;  %184 = vst.msk [vmem:[#allocation2] sm:$0xff] (!%p138_p3), %vm183_vm0, %v358_v3  ;;  %s359_s24 = smov (!%p138_p3), 1  }
   0xe   : > { %s424_s9 = smov (!%p164_p4, %s346_s9), 1  ;;  %v193_v4 = vld [vmem:[#allocation3] sm:$0xff]  ;;  %v187_v5 = vld [vmem:[#allocation2] sm:$0xff] }
   0xf   : > { %s299_s13 = sshll.u32 %s424_s9, 3 }
  0x10   : > { %s170_s16 = scalar_lea.vmem %s416_s0, %s299_s13  ;;  %s174_s19 = scalar_lea.vmem %s417_s1, %s299_s13 }
  0x11   : > { %v186_v1 = vld [vmem:[%s170_s16] sm:$0xff]  ;;  %s178_s23 = scalar_lea.vmem %s418_s2, %s299_s13 }
  0x12   : > { %194 = vmax.xlane.f32.xlu0 %v186_v1  ;;  %188 = vmin.xlane.f32.xlu1 %v186_v1  ;;  %v203_v2 = vld [vmem:[%s174_s19] sm:$0xff] }
  0x28   : > { %208 = vrot.lane.b32.xlu0 %v203_v2, %s357_s20 }
  0x9f   : > { %v195_v6 = vpop.xlane.xlu0 %194  ;;  %v189_v7 = vpop.xlane.xlu1 %188 }
  0xa0   : > { %v196_v8 = vmax.f32 %v193_v4, %v195_v6  ;;  %v190_v9 = vmin.f32 %v187_v5, %v189_v7 }
  0xa2   : > { %197 = vst.msk [vmem:[#allocation3] sm:$0xff] %vm183_vm0, %v196_v8  ;;  %192 = vst.msk [vmem:[#allocation2] sm:$0xff] %vm183_vm0, %v190_v9 }
  0xa3   : > { %v209_v10 = vpop.permute.xlu0 %208 }
  0xa9   : > { %v202_v11 = vld [vmem:[#allocation3] sm:$0xff]  ;;  %v201_v12 = vld [vmem:[#allocation2] sm:$0xff] }
  0xaa   : > { %v211_v13 = vmax.f32 %v202_v11, %v209_v10  ;;  %v204_v14 = vmin.f32 %v201_v12, %v203_v2 }
  0xac   : > { %213 = vrot.lane.b32.xlu1 %v211_v13, %s359_s24  ;;  %205 = vst.msk [vmem:[%s178_s23] sm:$0xff] %vm183_vm0, %v204_v14 }
 0x11e   : > { %v214_v15 = vpop.permute.xlu1 %213 }
 0x11f   : > { %217 = vst.msk [vmem:[%s178_s23] sm:$0xff] %vm216_vm1, %v214_v15 }
 0x120 PF: > { %s12_s11 = sadd.s32 1, %s354_s11   ;;  %s419_s9 = smov %s350_s10 }
 0x121   : > { %p9_p5 = scmp.ge.s32.totalorder %s12_s11, 4   ;;  %s420_s10 = smov %s422_s12 }
 0x123   :  { %11 = sbr.rel (!%p9_p5) target bundleno = 2 (0x2), region = 69 }

</bundles_post_ra>
